<compile_context>
chip_gen: v5e
topology: v5e:2x2
jax: 0.10.0
libtpu: 0.0.40
codegen_flags: <defaults>
</compile_context>

<pallas_src>
import functools

import numpy as np
import jax
import jax.numpy as jnp
from jax.experimental import pallas as pl
from jax.experimental.pallas import tpu as pltpu


# ----------------------------------------------------------------------------
# Pallas kernel: dense elementwise BCE + packed per-lane partial sums.
# ----------------------------------------------------------------------------
def _yolo_loss_kernel(pred_ref, ytrue_ref, out_ref, *, num_classes,
                      label_smoothing, conf_idx):
    # pred_ref : (1, ch_block, R, 128) raw logits; channel `conf_idx` is the
    #            objectness logit, channels conf_idx+1.. are the classes.
    #            x/y/h/w only feed the reference's dead GIoU path (box2==box1)
    #            and are never read here.
    # ytrue_ref: (1, 1 + nc, R, 128) bf16 targets (row 0 = objectness).
    p = pred_ref[0]                                    # (ch, R, 128) logits
    t = ytrue_ref[0].astype(jnp.float32)               # (1+nc, R, 128)

    obj = t[0]                                         # (R, 128)
    mask = (obj == 1.0).astype(jnp.float32)

    # Reference BCE with its one-sided clip (p <= 1 - eps), in logits form:
    #   -log(p_c)     = max(softplus(-x), -log(1 - eps))
    #   -log(1 - p_c) = min(softplus( x), -log(eps))
    # softplus(+-x) share log(1 + exp(-|x|)) -> one exp + one log per element.
    neg_log_eps = 16.11809565095832                    # -log(1e-7)
    neg_log_1m_eps = 1.0000000494736474e-07            # -log(1 - 1e-7)

    def bce_with_logits(x, tgt):
        sp = jnp.log(1.0 + jnp.exp(-jnp.abs(x)))
        nl_p = jnp.maximum(sp + jnp.maximum(-x, 0.0), neg_log_1m_eps)
        nl_1mp = jnp.minimum(sp + jnp.maximum(x, 0.0), neg_log_eps)
        return tgt * nl_p + (1.0 - tgt) * nl_1mp

    # Objectness: giou == 1 exactly in the reference (box2 == box1), so
    # tobj == mask and the localization loss is identically zero.
    conf_logits = p[conf_idx].astype(jnp.float32)              # (R, 128)
    bce_conf = bce_with_logits(conf_logits, mask)

    # Classes.  Smoothing is skipped entirely at trace time when it is 0.
    cls_logits = p[conf_idx + 1:].astype(jnp.float32)          # (nc, R, 128)
    cls_tgt = t[1:]
    if label_smoothing:
        cls_tgt = (1.0 - label_smoothing) * cls_tgt + label_smoothing / num_classes
    bce_cls = bce_with_logits(cls_logits, cls_tgt)             # (nc, R, 128)

    # Sum over class channels first, then a single mask multiply per cell.
    cls_per_cell = jnp.sum(bce_cls, axis=0)                    # (R, 128)

    # Per-lane partial sums packed into one aligned (8, 128) store:
    #   row 0 = positive count, row 1 = class BCE sum, row 2 = conf BCE sum.
    cnt_lane = jnp.sum(mask, axis=0, keepdims=True)            # (1, 128)
    cls_lane = jnp.sum(cls_per_cell * mask, axis=0, keepdims=True)
    conf_lane = jnp.sum(bce_conf, axis=0, keepdims=True)
    packed = jnp.concatenate(
        [cnt_lane, cls_lane, conf_lane, jnp.zeros((5, 128), jnp.float32)],
        axis=0)                                                # (8, 128)
    out_ref[...] = packed.reshape(1, 1, 8, 128)


# ----------------------------------------------------------------------------
# VMEM budget / tile selection.
# ----------------------------------------------------------------------------
def _default_vmem_budget():
    """(block-footprint budget, vmem_limit_bytes), derived from the chip."""
    try:
        phys = pltpu.get_tpu_info().vmem_capacity_bytes
    except Exception:
        phys = 64 << 20          # v7x per-TensorCore VMEM: the tightest case
    footprint = min(phys // 3, 24 << 20)       # pipelined blocks + f32 temps
    limit = min(phys * 3 // 4, footprint * 2 + (8 << 20))
    return int(footprint), int(limit)


def _pick_tile_rows(n_rows, max_rows):
    """tile_rows (full extent or multiple of 8) and the padded row count."""
    if n_rows <= max_rows:
        return n_rows, n_rows                  # full-extent block: always legal
    tile = max(8, (max_rows // 8) * 8)         # sublane-aligned, unmasked DMAs
    padded = ((n_rows + tile - 1) // tile) * tile
    return tile, padded


# ----------------------------------------------------------------------------
# Wrapper: free layout views, one fused copy for y_true, pallas_call, glue.
# ----------------------------------------------------------------------------
def yolo_loss(images, y_true, *, layer, anchors, num_classes, input_shape,
              anchors_mask=((6, 7, 8), (3, 4, 5), (0, 1, 2)),
              label_smoothing=0.0, block_budget_bytes=None,
              vmem_limit_bytes=None):
    B = images.shape[0]
    in_h, in_w = images.shape[2], images.shape[3]
    na = len(anchors_mask[layer])
    bbox_attrs = 5 + num_classes
    nco = 1 + num_classes                      # objectness + classes
    assert images.shape[1] == na * bbox_attrs
    assert y_true.shape == (B, na, in_h, in_w, bbox_attrs)
    del anchors      # only feeds the reference's dead (box2 == box1) GIoU path

    HW = in_h * in_w
    N = B * na * HW

    if block_budget_bytes is None or vmem_limit_bytes is None:
        budget, limit = _default_vmem_budget()
        block_budget_bytes = block_budget_bytes or budget
        vmem_limit_bytes = vmem_limit_bytes or limit

    # Prediction channel window: only conf + classes are read.  Blocked
    # indexing can express the element offset 4 only when (1 + nc) divides 4;
    # otherwise fall back to fetching all bbox_attrs channels.
    if 4 % nco == 0:
        ch_block, ch_index, conf_idx = nco, 4 // nco, 0
    else:
        # TODO(synk): for nc not in {1, 3} the dead x/y/h/w channels
        # (4/(5+nc) of pred traffic, ~5% at nc=80) are still DMA'd; dropping
        # them needs element-offset blocks or a manual-DMA pipeline.
        ch_block, ch_index, conf_idx = bbox_attrs, 0, 4

    isz_p = np.dtype(images.dtype).itemsize
    # Real per-row VMEM footprint: 2 pipeline buffers per input block plus
    # ~4 block-sized f32 temps inside the kernel.
    bytes_per_row = (2 * ch_block * 128 * isz_p          # pred, double-buffered
                     + 2 * nco * 128 * 2                 # y_true bf16, 2 bufs
                     + 4 * max(ch_block, nco) * 128 * 4)  # in-kernel f32 temps
    n_rows_raw = pl.cdiv(HW, 128)
    max_rows = max(8, block_budget_bytes // bytes_per_row)
    tile_rows, n_rows = _pick_tile_rows(n_rows_raw, max_rows)
    n_tiles = n_rows // tile_rows
    HW_pad = n_rows * 128

    # Prediction: the NCHW head output is already channel-major per
    # (batch, anchor), so this reshape is a free view.
    pred = images.reshape(B * na, bbox_attrs, HW)
    if HW_pad != HW:
        # TODO(synk): the lane/row tail (40x40 / 20x20 heads) costs one extra
        # HBM pass over pred; an unpadded 3-D block + in-kernel iota masking
        # would avoid it.  Padding logits with a large negative makes padded
        # cells contribute exactly 0 to the conf BCE.
        pred = jnp.pad(pred, ((0, 0), (0, 0), (0, HW_pad - HW)),
                       constant_values=-1e4)
    pred = pred.reshape(B * na, bbox_attrs, n_rows, 128)

    # Targets: drop the dead x/y/h/w channels, downcast to bf16 (values are
    # exact 0/1; smoothing stays in-kernel), transpose to channel-major and
    # pad -- all folded into the single unavoidable y_true copy.
    yt = y_true.reshape(B * na, HW, bbox_attrs)[:, :, 4:]
    yt = jnp.transpose(yt, (0, 2, 1)).astype(jnp.bfloat16)
    if HW_pad != HW:
        yt = jnp.pad(yt, ((0, 0), (0, 0), (0, HW_pad - HW)))
    yt = yt.reshape(B * na, nco, n_rows, 128)

    kernel = functools.partial(_yolo_loss_kernel, num_classes=num_classes,
                               label_smoothing=float(label_smoothing),
                               conf_idx=conf_idx)
    pred_spec = pl.BlockSpec((1, ch_block, tile_rows, 128),
                             lambda i, j: (i, ch_index, j, 0))
    yt_spec = pl.BlockSpec((1, nco, tile_rows, 128), lambda i, j: (i, 0, j, 0))
    out_spec = pl.BlockSpec((1, 1, 8, 128), lambda i, j: (i, j, 0, 0))

    parts = pl.pallas_call(
        kernel,
        out_shape=jax.ShapeDtypeStruct((B * na, n_tiles, 8, 128), jnp.float32),
        grid_spec=pltpu.PrefetchScalarGridSpec(
            num_scalar_prefetch=0,
            grid=(B * na, n_tiles),
            in_specs=[pred_spec, yt_spec],
            out_specs=out_spec),
        compiler_params=pltpu.CompilerParams(
            dimension_semantics=("parallel", "parallel"),
            vmem_limit_bytes=int(vmem_limit_bytes)),
    )(pred, yt)

    cnt = jnp.sum(parts[:, :, 0, :])
    s_cls = jnp.sum(parts[:, :, 1, :])
    s_conf = jnp.sum(parts[:, :, 2, :])

    balance = (0.4, 1.0, 4.0)
    obj_ratio = 1.0 * (input_shape[0] * input_shape[1]) / 640.0 ** 2
    cls_ratio = 0.5 * (num_classes / 80.0)

    safe_cnt = jnp.maximum(cnt, 1.0)
    loss_cls = s_cls / (safe_cnt * num_classes)
    loss_conf = s_conf / float(N)
    # loss_loc * box_ratio is omitted: the reference applies box_giou with
    # box2 == box1, so giou == 1 at every cell and that term is exactly 0.
    loss = jnp.where(cnt > 0.0, loss_cls * cls_ratio, 0.0)
    loss = loss + loss_conf * balance[layer] * obj_ratio
    return loss


# ----------------------------------------------------------------------------
# Pure NumPy reference mirroring the PyTorch forward (for validation).
# ----------------------------------------------------------------------------
def yolo_loss_ref_np(layer, images, y_true, anchors, num_classes, input_shape,
                     anchors_mask, label_smoothing=0.0):
    images = np.asarray(images, np.float32)
    y_true = np.asarray(y_true, np.float32)
    B, _, in_h, in_w = images.shape
    na = len(anchors_mask[layer])
    ba = 5 + num_classes
    stride_h = input_shape[0] / in_h
    stride_w = input_shape[0] / in_w
    scaled = np.array([(aw / stride_w, ah / stride_h) for aw, ah in anchors],
                      np.float32)
    pred = images.reshape(B, na, ba, in_h, in_w).transpose(0, 1, 3, 4, 2)
    sig = 1.0 / (1.0 + np.exp(-pred))
    x, y, h, w, conf = sig[..., 0], sig[..., 1], sig[..., 2], sig[..., 3], sig[..., 4]
    pred_cls = sig[..., 5:]

    shp = (B, na, in_h, in_w)
    gx = np.broadcast_to(np.arange(in_w, dtype=np.float32), shp)
    gy = np.broadcast_to(np.arange(in_h, dtype=np.float32)[:, None], shp)
    la = scaled[list(anchors_mask[layer])]
    aw_ = np.broadcast_to(la[:, 0][None, :, None, None], shp)
    ah_ = np.broadcast_to(la[:, 1][None, :, None, None], shp)

    pbx = x * 2 - 0.5 + gx
    pby = y * 2 - 0.5 + gy
    pbw = (w * 2) ** 2 * aw_
    pbh = (h * 2) ** 2 * ah_

    # box_giou with box2 == box1 (as in the reference implementation)
    min_x, max_x = pbx - pbw / 2, pbx + pbw / 2
    min_y, max_y = pby - pbh / 2, pby + pbh / 2
    iw = np.maximum(max_x - min_x, 0.0)
    ih = np.maximum(max_y - min_y, 0.0)
    inter = iw * ih
    union = pbw * pbh + pbw * pbh - inter
    iou = inter / union
    c_area = np.maximum(max_x - min_x, 0.0) * np.maximum(max_y - min_y, 0.0)
    giou = iou - (c_area - union) / c_area

    eps = 1e-7

    def bce(p, t):
        p = np.minimum(p, 1.0 - eps)   # faithful to the buggy clip_by_tensor
        return -t * np.log(p) - (1.0 - t) * np.log(1.0 - p)

    mask = y_true[..., 4] == 1
    n = mask.sum()
    loss = 0.0
    if n != 0:
        loss_loc = np.mean((1.0 - giou)[mask])
        sm = (1.0 - label_smoothing) * y_true[..., 5:][mask] + \
            label_smoothing / num_classes
        loss_cls = np.mean(bce(pred_cls[mask], sm))
        box_ratio = 0.05
        cls_ratio = 0.5 * (num_classes / 80.0)
        loss += loss_loc * box_ratio + loss_cls * cls_ratio
        tobj = np.where(mask, np.clip(giou, 0.0, None), 0.0).astype(np.float32)
    else:
        tobj = np.zeros_like(y_true[..., 4])
    loss_conf = np.mean(bce(conf, tobj))
    balance = [0.4, 1.0, 4.0]
    obj_ratio = input_shape[0] * input_shape[1] / 640.0 ** 2
    loss += loss_conf * balance[layer] * obj_ratio
    return np.float32(loss)


if __name__ == "__main__":
    key = jax.random.PRNGKey(0)
    B, in_h, in_w = 2, 16, 16
    num_classes = 3
    na = 3
    bbox_attrs = 5 + num_classes
    layer = 0
    input_shape = (512, 512)
    anchors = [(10, 13), (16, 30), (33, 23), (30, 61), (62, 45), (59, 119),
               (116, 90), (156, 198), (373, 326)]
    anchors_mask = [[6, 7, 8], [3, 4, 5], [0, 1, 2]]

    k1, k2, k3, k4 = jax.random.split(key, 4)
    # "images" in the PyTorch module is the raw YOLO head output (NCHW).
    images = jax.random.normal(k1, (B, na * bbox_attrs, in_h, in_w), jnp.float32)

    # Synthetic y_true: (B, na, H, W, 5 + num_classes)
    obj = (jax.random.uniform(k2, (B, na, in_h, in_w)) < 0.1).astype(jnp.float32)
    box = jax.random.uniform(k3, (B, na, in_h, in_w, 4), minval=0.5, maxval=4.0)
    cls_idx = jax.random.randint(k4, (B, na, in_h, in_w), 0, num_classes)
    cls_onehot = jax.nn.one_hot(cls_idx, num_classes, dtype=jnp.float32)
    y_true = jnp.concatenate(
        [box, obj[..., None], cls_onehot * obj[..., None]], axis=-1)

    loss_fn = jax.jit(functools.partial(
        yolo_loss, layer=layer, anchors=anchors, num_classes=num_classes,
        input_shape=input_shape, anchors_mask=anchors_mask,
        label_smoothing=0.0))
    loss = jax.block_until_ready(loss_fn(images, y_true))

    ref = yolo_loss_ref_np(layer, np.asarray(images), np.asarray(y_true),
                           anchors, num_classes, input_shape, anchors_mask,
                           label_smoothing=0.0)

    assert np.isfinite(float(loss))
    np.testing.assert_allclose(float(loss), float(ref), rtol=1e-4, atol=1e-5)
    print("KERNEL_OK")
</pallas_src>

<mosaic_0001>
module attributes {stable_mosaic.version = 11 : i64} {
  func.func @_yolo_loss_kernel(%arg0: i32, %arg1: i32, %arg2: memref<1x4x2x128xf32, #tpu.memory_space<vmem>>, %arg3: memref<1x4x2x128xbf16, #tpu.memory_space<vmem>>, %arg4: memref<1x1x8x128xf32, #tpu.memory_space<vmem>>) attributes {dimension_semantics = [#tpu.dimension_semantics<parallel>, #tpu.dimension_semantics<parallel>], iteration_bounds = array<i64: 6, 1>, scalar_prefetch = 0 : i64, scratch_operands = 0 : i64, tpu.core_type = #tpu.core_type<tc>, window_params = [{transform_indices = @transform_0, window_bounds = array<i64: 1, 4, 2, 128>}, {transform_indices = @transform_1, window_bounds = array<i64: 1, 4, 2, 128>}, {transform_indices = @transform_2, window_bounds = array<i64: 1, 1, 8, 128>}]} {
    %c0 = arith.constant 0 : index
    %c0_0 = arith.constant 0 : index
    %c0_1 = arith.constant 0 : index
    %c0_2 = arith.constant 0 : index
    %0 = vector.load %arg2[%c0, %c0_0, %c0_1, %c0_2] : memref<1x4x2x128xf32, #tpu.memory_space<vmem>>, vector<1x4x2x128xf32>
    %1 = vector.shape_cast %0 : vector<1x4x2x128xf32> to vector<4x2x128xf32>
    %c0_3 = arith.constant 0 : index
    %c0_4 = arith.constant 0 : index
    %c0_5 = arith.constant 0 : index
    %c0_6 = arith.constant 0 : index
    %2 = vector.load %arg3[%c0_3, %c0_4, %c0_5, %c0_6] : memref<1x4x2x128xbf16, #tpu.memory_space<vmem>>, vector<1x4x2x128xbf16>
    %3 = vector.shape_cast %2 : vector<1x4x2x128xbf16> to vector<4x2x128xbf16>
    %4 = arith.extf %3 : vector<4x2x128xbf16> to vector<4x2x128xf32>
    %5 = vector.extract_strided_slice %4 {offsets = [0, 0, 0], sizes = [1, 2, 128], strides = [1, 1, 1]} : vector<4x2x128xf32> to vector<1x2x128xf32>
    %6 = vector.shape_cast %5 : vector<1x2x128xf32> to vector<2x128xf32>
    %cst = arith.constant 1.000000e+00 : f32
    %7 = vector.broadcast %cst : f32 to vector<2x128xf32>
    %8 = arith.cmpf oeq, %6, %7 : vector<2x128xf32>
    %9 = arith.extui %8 : vector<2x128xi1> to vector<2x128xi32>
    %10 = arith.sitofp %9 : vector<2x128xi32> to vector<2x128xf32>
    %11 = vector.extract_strided_slice %1 {offsets = [0, 0, 0], sizes = [1, 2, 128], strides = [1, 1, 1]} : vector<4x2x128xf32> to vector<1x2x128xf32>
    %12 = vector.shape_cast %11 : vector<1x2x128xf32> to vector<2x128xf32>
    %13 = math.absf %12 : vector<2x128xf32>
    %cst_7 = arith.constant 0.000000e+00 : f32
    %14 = vector.broadcast %cst_7 : f32 to vector<2x128xf32>
    %15 = arith.subf %14, %13 : vector<2x128xf32>
    %16 = math.exp %15 : vector<2x128xf32>
    %cst_8 = arith.constant 1.000000e+00 : f32
    %17 = vector.broadcast %cst_8 : f32 to vector<2x128xf32>
    %18 = arith.addf %17, %16 : vector<2x128xf32>
    %19 = math.log %18 : vector<2x128xf32>
    %cst_9 = arith.constant 0.000000e+00 : f32
    %20 = vector.broadcast %cst_9 : f32 to vector<2x128xf32>
    %21 = arith.subf %20, %12 : vector<2x128xf32>
    %cst_10 = arith.constant 0.000000e+00 : f32
    %22 = vector.broadcast %cst_10 : f32 to vector<2x128xf32>
    %23 = arith.maximumf %21, %22 : vector<2x128xf32>
    %24 = arith.addf %19, %23 : vector<2x128xf32>
    %cst_11 = arith.constant 1.00000008E-7 : f32
    %25 = vector.broadcast %cst_11 : f32 to vector<2x128xf32>
    %26 = arith.maximumf %24, %25 : vector<2x128xf32>
    %cst_12 = arith.constant 0.000000e+00 : f32
    %27 = vector.broadcast %cst_12 : f32 to vector<2x128xf32>
    %28 = arith.maximumf %12, %27 : vector<2x128xf32>
    %29 = arith.addf %19, %28 : vector<2x128xf32>
    %cst_13 = arith.constant 16.1180954 : f32
    %30 = vector.broadcast %cst_13 : f32 to vector<2x128xf32>
    %31 = arith.minimumf %29, %30 : vector<2x128xf32>
    %32 = arith.mulf %10, %26 : vector<2x128xf32>
    %cst_14 = arith.constant 1.000000e+00 : f32
    %33 = vector.broadcast %cst_14 : f32 to vector<2x128xf32>
    %34 = arith.subf %33, %10 : vector<2x128xf32>
    %35 = arith.mulf %34, %31 : vector<2x128xf32>
    %36 = arith.addf %32, %35 : vector<2x128xf32>
    %37 = vector.extract_strided_slice %1 {offsets = [1, 0, 0], sizes = [3, 2, 128], strides = [1, 1, 1]} : vector<4x2x128xf32> to vector<3x2x128xf32>
    %38 = vector.extract_strided_slice %4 {offsets = [1, 0, 0], sizes = [3, 2, 128], strides = [1, 1, 1]} : vector<4x2x128xf32> to vector<3x2x128xf32>
    %39 = math.absf %37 : vector<3x2x128xf32>
    %cst_15 = arith.constant 0.000000e+00 : f32
    %40 = vector.broadcast %cst_15 : f32 to vector<3x2x128xf32>
    %41 = arith.subf %40, %39 : vector<3x2x128xf32>
    %42 = math.exp %41 : vector<3x2x128xf32>
    %cst_16 = arith.constant 1.000000e+00 : f32
    %43 = vector.broadcast %cst_16 : f32 to vector<3x2x128xf32>
    %44 = arith.addf %43, %42 : vector<3x2x128xf32>
    %45 = math.log %44 : vector<3x2x128xf32>
    %cst_17 = arith.constant 0.000000e+00 : f32
    %46 = vector.broadcast %cst_17 : f32 to vector<3x2x128xf32>
    %47 = arith.subf %46, %37 : vector<3x2x128xf32>
    %cst_18 = arith.constant 0.000000e+00 : f32
    %48 = vector.broadcast %cst_18 : f32 to vector<3x2x128xf32>
    %49 = arith.maximumf %47, %48 : vector<3x2x128xf32>
    %50 = arith.addf %45, %49 : vector<3x2x128xf32>
    %cst_19 = arith.constant 1.00000008E-7 : f32
    %51 = vector.broadcast %cst_19 : f32 to vector<3x2x128xf32>
    %52 = arith.maximumf %50, %51 : vector<3x2x128xf32>
    %cst_20 = arith.constant 0.000000e+00 : f32
    %53 = vector.broadcast %cst_20 : f32 to vector<3x2x128xf32>
    %54 = arith.maximumf %37, %53 : vector<3x2x128xf32>
    %55 = arith.addf %45, %54 : vector<3x2x128xf32>
    %cst_21 = arith.constant 16.1180954 : f32
    %56 = vector.broadcast %cst_21 : f32 to vector<3x2x128xf32>
    %57 = arith.minimumf %55, %56 : vector<3x2x128xf32>
    %58 = arith.mulf %38, %52 : vector<3x2x128xf32>
    %cst_22 = arith.constant 1.000000e+00 : f32
    %59 = vector.broadcast %cst_22 : f32 to vector<3x2x128xf32>
    %60 = arith.subf %59, %38 : vector<3x2x128xf32>
    %61 = arith.mulf %60, %57 : vector<3x2x128xf32>
    %62 = arith.addf %58, %61 : vector<3x2x128xf32>
    %cst_23 = arith.constant dense<0.000000e+00> : vector<2x128xf32>
    %63 = vector.multi_reduction <add>, %62, %cst_23 [0] : vector<3x2x128xf32> to vector<2x128xf32>
    %cst_24 = arith.constant dense<0.000000e+00> : vector<128xf32>
    %64 = vector.multi_reduction <add>, %10, %cst_24 [0] : vector<2x128xf32> to vector<128xf32>
    %65 = vector.shape_cast %64 : vector<128xf32> to vector<1x128xf32>
    %66 = arith.mulf %63, %10 : vector<2x128xf32>
    %cst_25 = arith.constant dense<0.000000e+00> : vector<128xf32>
    %67 = vector.multi_reduction <add>, %66, %cst_25 [0] : vector<2x128xf32> to vector<128xf32>
    %68 = vector.shape_cast %67 : vector<128xf32> to vector<1x128xf32>
    %cst_26 = arith.constant dense<0.000000e+00> : vector<128xf32>
    %69 = vector.multi_reduction <add>, %36, %cst_26 [0] : vector<2x128xf32> to vector<128xf32>
    %70 = vector.shape_cast %69 : vector<128xf32> to vector<1x128xf32>
    %cst_27 = arith.constant 0.000000e+00 : f32
    %71 = vector.broadcast %cst_27 : f32 to vector<5x128xf32>
    %72 = tpu.concatenate %65, %68, %70, %71 in 0 : vector<1x128xf32>, vector<1x128xf32>, vector<1x128xf32>, vector<5x128xf32> -> vector<8x128xf32>
    %73 = vector.shape_cast %72 : vector<8x128xf32> to vector<1x1x8x128xf32>
    %c0_28 = arith.constant 0 : index
    %c0_29 = arith.constant 0 : index
    %c0_30 = arith.constant 0 : index
    %c0_31 = arith.constant 0 : index
    %74 = vector.load %arg4[%c0_28, %c0_29, %c0_30, %c0_31] : memref<1x1x8x128xf32, #tpu.memory_space<vmem>>, vector<1x1x8x128xf32>
    tpu.vector_store %arg4[%c0_28, %c0_29, %c0_30, %c0_31], %73 {strides = array<i32>} : memref<1x1x8x128xf32, #tpu.memory_space<vmem>>, vector<1x1x8x128xf32>,
    return
  }
  func.func @transform_0(%arg0: i32, %arg1: i32) -> (i32, i32, i32, i32) {
    %c1_i32 = arith.constant 1 : i32
    %c0_i32 = arith.constant 0 : i32
    %c0_i32_0 = arith.constant 0 : i32
    return %arg0, %c1_i32, %arg1, %c0_i32 : i32, i32, i32, i32
  }
  func.func @transform_1(%arg0: i32, %arg1: i32) -> (i32, i32, i32, i32) {
    %c0_i32 = arith.constant 0 : i32
    %c0_i32_0 = arith.constant 0 : i32
    %c0_i32_1 = arith.constant 0 : i32
    return %arg0, %c0_i32, %arg1, %c0_i32_0 : i32, i32, i32, i32
  }
  func.func @transform_2(%arg0: i32, %arg1: i32) -> (i32, i32, i32, i32) {
    %c0_i32 = arith.constant 0 : i32
    %c0_i32_0 = arith.constant 0 : i32
    %c0_i32_1 = arith.constant 0 : i32
    return %arg0, %arg1, %c0_i32, %c0_i32_0 : i32, i32, i32, i32
  }
}

</mosaic_0001>

<bundles_post_ra>
// kernel: yolo_loss.1
= control target key start
LH: loop header
LB: loop body
LE: loop exit
PB: predicated region body
PF: predicated region fallthrough
CT: control target
= control target key end

     0   :  { %s518_s9 = smov 0   ;;  %s520_s10 = smov 0   ;;  %s592_s0 = inlined_call_operand.vmem [shape: f32[6,8,2,128], index: 0, kind: input, shape index: {}]   ;;  %s593_s1 = inlined_call_operand.vmem [shape: bf16[6,4,2,128], index: 1, kind: input, shape index: {}]   ;;  %s594_s2 = inlined_call_operand.vmem [shape: f32[6,1,8,128], index: 2, kind: output, shape index: {}]  }
   0x1   :  { %s522_s11 = smov 0  }
   0x2 LB: > { %s24_s12 = sadd.s32 1, %s496_s10  ;;  %p424_p0 = scmp.ge.s32.totalorder %s500_s11, 1  ;;  %s500_s11 = sphi %s522_s11, %s12_s11   ;;  %s496_s10 = sphi %s520_s10, %s596_s10   ;;  %s492_s9 = sphi %s518_s9, %s595_s9  }
   0x3   : > { %p26_p1 = scmp.ge.s32.totalorder %s24_s12, 6  ;;  %p146_p2 = scmp.lt.s32.totalorder %s500_s11, 7 }
   0x5   : > { %s598_s12 = smov (%p26_p1, %s24_s12), 0  ;;  %p147_p3 = pnand %p424_p0, %p146_p2 }
   0x6   : > { %p181_p4 = scmp.lt.s32.totalorder (!%p147_p3), %s492_s9, 5 }
   0x7   : > { %150 = sbr.rel (%p147_p3) target bundleno = 74 (0x4a), region = 28 }
   0xc   : > { %s600_s9 = smov (!%p181_p4, %s492_s9), 5  ;;  %v502_v32 = vmov 0.0   ;;  %vm291_vm1 = vcmask 1041408   ;;  %vm319_vm2 = vcmask 1040384   ;;  %vm322_vm3 = vcmask 1042432  }
   0xd   : > { %s436_s13 = sshll.u32 %s600_s9, 4  ;;  %s427_s17 = sshll.u32 %s600_s9, 2 }
   0xe   : > { %s372_s16 = scalar_lea.vmem %s592_s0, %s436_s13  ;;  %s196_s20 = scalar_lea.vmem %s593_s1, %s427_s17 }
   0xf   : > { %v542_v0 = vld [vmem:[%s372_s16 + $0x8] sm:$0x3]  ;;  %v544_v1 = vld [vmem:[%s372_s16 + $0xa] sm:$0x3]  ;;  %v546_v2 = vld [vmem:[%s372_s16 + $0xc] sm:$0x3] }
  0x10   : > { %v548_v3 = vld [vmem:[%s372_s16 + $0xe] sm:$0x3]  ;;  %v219_v4 = vand.u32 2147483647, %v542_v0  ;;  %v237_v5 = vand.u32 2147483647, %v544_v1 }
  0x11   : > { %v238_v7 = vand.u32 2147483647, %v546_v2  ;;  %v239_v8 = vand.u32 2147483647, %v548_v3  ;;  %v208_v16 = vld [vmem:[%s196_s20] sm:$0x1] }
  0x12   : > { %v220_v6 = vsub.f32 0.0, %v219_v4  ;;  %v240_v9 = vsub.f32 0.0, %v237_v5  ;;  %v212_v17 = vunpack.c.l.bf16 %v208_v16  ;;  %v209_v24 = vld [vmem:[%s196_s20 + $0x1] sm:$0x1]  ;;  %v210_v26 = vld [vmem:[%s196_s20 + $0x2] sm:$0x1] }
  0x13   : > { %v241_v11 = vsub.f32 0.0, %v238_v7  ;;  %v242_v12 = vsub.f32 0.0, %v239_v8  ;;  %v211_v27 = vld [vmem:[%s196_s20 + $0x3] sm:$0x1]  ;;  %v226_v28 = vsub.f32 0.0, %v542_v0  ;;  %v258_v30 = vsub.f32 0.0, %v544_v1 }
  0x14   : > { %v221_v10 = vmul.f32 1.442695, %v220_v6  ;;  %v243_v13 = vmul.f32 1.442695, %v240_v9  ;;  %vm216_vm0 = vcmp.eq.f32.partialorder %v212_v17, 1.0  ;;  %v259_v31 = vsub.f32 0.0, %v546_v2 }
  0x15   : > { %v245_v14 = vmul.f32 1.442695, %v241_v11  ;;  %v247_v15 = vmul.f32 1.442695, %v242_v12  ;;  %v561_v33 = vsel %vm216_vm0, 1.0, %v502_v32  ;;  %v260_v34 = vsub.f32 0.0, %v548_v3 }
  0x16   : > { %462 = vpow2.f32 %v221_v10  ;;  %v213_v35 = vunpack.c.l.bf16 %v209_v24  ;;  %v214_v36 = vunpack.c.l.bf16 %v210_v26  ;;  %v215_v37 = vunpack.c.l.bf16 %v211_v27  ;;  %s428_s21 = sshll.u32 %s600_s9, 3 }
  0x17   : > { %464 = vpow2.f32 %v243_v13  ;;  %v227_v38 = vmax.f32 %v226_v28, 0.0  ;;  %v230_v39 = vmax.f32 %v542_v0, 0.0  ;;  %v234_v41 = vsub.f32 1.0, %v561_v33  ;;  %s203_s24 = scalar_lea.vmem %s594_s2, %s428_s21 }
  0x18   : > { %466 = vpow2.f32 %v245_v14  ;;  %v261_v42 = vmax.f32 %v258_v30, 0.0  ;;  %v262_v43 = vmax.f32 %v259_v31, 0.0  ;;  %v270_v44 = vmax.f32 %v544_v1, 0.0 }
  0x19   : > { %468 = vpow2.f32 %v247_v15  ;;  %v263_v47 = vmax.f32 %v260_v34, 0.0  ;;  %v271_v48 = vmax.f32 %v546_v2, 0.0  ;;  %v272_v49 = vmax.f32 %v548_v3, 0.0 }
  0x1a   : > { %v282_v52 = vsub.f32 1.0, %v213_v35  ;;  %v283_v53 = vsub.f32 1.0, %v214_v36  ;;  %v284_v54 = vsub.f32 1.0, %v215_v37  ;;  %v297_v62 = vsel %vm291_vm1, %v561_v33, 0.0 }
  0x1c   : > { %v463_v18 = vpop.eup %462 }
  0x1d   : > { %v465_v19 = vpop.eup %464  ;;  %v223_v20 = vadd.f32 1.0, %v463_v18  ;;  %v298_v18 = vrot.slane %v297_v62, 4 }
  0x1e   : > { %v467_v21 = vpop.eup %466  ;;  %v249_v22 = vadd.f32 1.0, %v465_v19 }
  0x1f   : > { %v469_v23 = vpop.eup %468  ;;  %470 = vlog2.f32 %v223_v20  ;;  %v250_v25 = vadd.f32 1.0, %v467_v21  ;;  %v299_v28 = vadd.f32 %v298_v18, %v297_v62 }
  0x20   : > { %v251_v29 = vadd.f32 1.0, %v469_v23  ;;  %472 = vlog2.f32 %v249_v22 }
  0x21   : > { %474 = vlog2.f32 %v250_v25  ;;  %v300_v34 = vrot.slane %v299_v28, 2 }
  0x22   : > { %476 = vlog2.f32 %v251_v29 }
  0x25   : > { %v471_v40 = vpop.eup %470 }
  0x26   : > { %v473_v45 = vpop.eup %472  ;;  %v225_v46 = vmul.f32 0.6931472, %v471_v40 }
  0x27   : > { %v475_v50 = vpop.eup %474  ;;  %v253_v51 = vmul.f32 0.6931472, %v473_v45 }
  0x28   : > { %v477_v55 = vpop.eup %476  ;;  %v228_v56 = vadd.f32 %v227_v38, %v225_v46  ;;  %v231_v57 = vadd.f32 %v230_v39, %v225_v46  ;;  %v255_v58 = vmul.f32 0.6931472, %v475_v50  ;;  %v301_v38 = vadd.f32 %v300_v34, %v299_v28 }
  0x29   : > { %v257_v59 = vmul.f32 0.6931472, %v477_v55  ;;  %v264_v60 = vadd.f32 %v261_v42, %v253_v51  ;;  %v273_v61 = vadd.f32 %v270_v44, %v253_v51 }
  0x2a   : > { %v229_v63 = vmax.f32 %v228_v56, 1.0000001e-07  ;;  %v232_v0 = vmin.f32 %v231_v57, 16.118095  ;;  %v265_v1 = vadd.f32 %v262_v43, %v255_v58  ;;  %v274_v2 = vadd.f32 %v271_v48, %v255_v58 }
  0x2b   : > { %v266_v3 = vadd.f32 %v263_v47, %v257_v59  ;;  %v267_v4 = vmax.f32 %v264_v60, 1.0000001e-07  ;;  %v275_v5 = vadd.f32 %v272_v49, %v257_v59  ;;  %v276_v6 = vmin.f32 %v273_v61, 16.118095 }
  0x2c   : > { %v233_v7 = vmul.f32 %v561_v33, %v229_v63  ;;  %v235_v8 = vmul.f32 %v234_v41, %v232_v0  ;;  %v268_v9 = vmax.f32 %v265_v1, 1.0000001e-07  ;;  %v277_v10 = vmin.f32 %v274_v2, 16.118095 }
  0x2d   : > { %v269_v11 = vmax.f32 %v266_v3, 1.0000001e-07  ;;  %v278_v12 = vmin.f32 %v275_v5, 16.118095  ;;  %v279_v13 = vmul.f32 %v267_v4, %v213_v35  ;;  %v285_v14 = vmul.f32 %v282_v52, %v276_v6 }
  0x2e   : > { %v236_v15 = vadd.f32 %v235_v8, %v233_v7  ;;  %v280_v16 = vmul.f32 %v268_v9, %v214_v36  ;;  %v286_v17 = vmul.f32 %v283_v53, %v277_v10  ;;  %v302_v42 = vrot.slane %v301_v38, 1 }
  0x2f   : > { %v281_v19 = vmul.f32 %v269_v11, %v215_v37  ;;  %v287_v20 = vmul.f32 %v284_v54, %v278_v12  ;;  %v288_v21 = vadd.f32 %v285_v14, %v279_v13 }
  0x30   : > { %v289_v22 = vadd.f32 %v286_v17, %v280_v16  ;;  %v312_v23 = vsel %vm291_vm1, %v236_v15, 0.0  ;;  %v303_v46 = vadd.f32 %v302_v42, %v301_v38 }
  0x31   : > { %v290_v24 = vadd.f32 %v287_v20, %v281_v19  ;;  %v292_v25 = vsel %vm291_vm1, %v288_v21, 0.0  ;;  %v313_v26 = vrot.slane %v312_v23, 4 }
  0x32   : > { %v293_v27 = vsel %vm291_vm1, %v289_v22, 0.0 }
  0x33   : > { %v294_v29 = vadd.f32 %v293_v27, %v292_v25  ;;  %v295_v30 = vsel %vm291_vm1, %v290_v24, 0.0  ;;  %v314_v31 = vadd.f32 %v313_v26, %v312_v23 }
  0x35   : > { %v296_v32 = vadd.f32 %v295_v30, %v294_v29  ;;  %v315_v36 = vrot.slane %v314_v31, 2 }
  0x37   : > { %v304_v35 = vmul.f32 %v561_v33, %v296_v32  ;;  %v316_v40 = vadd.f32 %v315_v36, %v314_v31 }
  0x39   : > { %v305_v37 = vsel %vm291_vm1, %v304_v35, 0.0  ;;  %v317_v44 = vrot.slane %v316_v40, 1 }
  0x3a   : > { %v306_v39 = vrot.slane %v305_v37, 4 }
  0x3b   : > { %v318_v48 = vadd.f32 %v317_v44, %v316_v40 }
  0x3c   : > { %v307_v41 = vadd.f32 %v306_v39, %v305_v37 }
  0x3e   : > { %v308_v43 = vrot.slane %v307_v41, 2 }
  0x40   : > { %v309_v45 = vadd.f32 %v308_v43, %v307_v41 }
  0x42   : > { %v310_v47 = vrot.slane %v309_v45, 1 }
  0x44   : > { %v311_v49 = vadd.f32 %v310_v47, %v309_v45 }
  0x46   : > { %v320_v33 = vsel %vm319_vm2, %v303_v46, %v311_v49 }
  0x47   : > { %v321_v50 = vsel %vm291_vm1, %v320_v33, %v318_v48 }
  0x48   : > { %v323_v51 = vsel %vm322_vm3, %v321_v50, 0.0 }
  0x49   : > { %324 = vst [vmem:[%s203_s24] sm:$0xff] %v323_v51 }
  0x4a PF: > { %s12_s11 = sadd.s32 1, %s500_s11   ;;  %s595_s9 = smov %s496_s10 }
  0x4b   : > { %p9_p5 = scmp.ge.s32.totalorder %s12_s11, 8   ;;  %s596_s10 = smov %s598_s12 }
  0x4d   :  { %11 = sbr.rel (!%p9_p5) target bundleno = 2 (0x2), region = 61 }

</bundles_post_ra>
